<compile_context>
chip_gen: v7x
topology: tpu7x:2x2x1
jax: 0.10.0
libtpu: 0.0.40
codegen_flags: <defaults>
</compile_context>

<pallas_src>
import jax
import jax.numpy as jnp
import numpy as np
from jax.experimental import pallas as pl
from jax.experimental.pallas import tpu as pltpu  # noqa: F401  (TPU backend)


# ---------------------------------------------------------------------------
# Kernel 1: encoder feature projection  encoder_feature = W_h(h)
# Single grid step, whole batch folded into one matmul.
# ---------------------------------------------------------------------------
def encoder_features_kernel(hf_ref, wh_ref, enc_ref):
    enc_ref[...] = jnp.dot(hf_ref[...], wh_ref[...],
                           preferred_element_type=jnp.float32)


def precompute_encoder_features(h, W_h):
    """Computed once per sequence; reuse across decode steps."""
    b, t_k, n1 = h.shape
    H2 = W_h.shape[1]
    enc_flat = pl.pallas_call(
        encoder_features_kernel,
        out_shape=jax.ShapeDtypeStruct((b * t_k, H2), jnp.float32),
    )(h.reshape(b * t_k, n1), W_h)
    return enc_flat.reshape(b, t_k, H2)


# ---------------------------------------------------------------------------
# Kernel 2: one attention decode step, whole batch in a single grid step.
# ---------------------------------------------------------------------------
def attention_decode_kernel(enc_ref, h_ref, s_ref, mask_ref, cov_ref,
                            wd_ref, bd_ref, wc_ref, v_ref,
                            ct_ref, attn_ref, covout_ref):
    enc_feat = enc_ref[...]                    # (b, t_k, 2H)
    h        = h_ref[...]                      # (b, t_k, n1)
    mask     = mask_ref[...]                   # (b, t_k)   lane-dense
    cov      = cov_ref[...]                    # (b, t_k)   lane-dense

    # dec_fea = decode_proj(s_t_hat) for the whole batch: (b,2H)@(2H,2H) + b
    dec_fea = jnp.dot(s_ref[...], wd_ref[...],
                      preferred_element_type=jnp.float32) + bd_ref[...]     # (b, 2H)

    # coverage_feature = W_c(coverage): outer product (b,t_k,1) * (1,1,2H)
    cov_feat = cov[:, :, None] * wc_ref[...][None, :, :]                    # (b, t_k, 2H)

    # e = tanh(att_features)
    e = jnp.tanh(enc_feat + dec_fea[:, None, :] + cov_feat)                 # (b, t_k, 2H)

    # scores = v(e)  -> lane reduction over 2H
    scores = jnp.sum(e * v_ref[...][None, :, :], axis=-1)                   # (b, t_k)

    # softmax(scores)*mask / sum(softmax(scores)*mask)
    #   == exp(scores-m)*mask / sum(exp(scores-m)*mask)   (softmax denom cancels)
    m    = jnp.max(scores, axis=-1, keepdims=True)                          # (b, 1)
    ex   = jnp.exp(scores - m) * mask                                       # (b, t_k)
    norm = jnp.sum(ex, axis=-1, keepdims=True)                              # (b, 1)
    # NOTE: faithful to the reference -- an all-zero mask row would yield NaN.
    attn = ex * pl.reciprocal(norm, approx=True)                            # (b, t_k)

    # c_t = bmm(attn, h) == sum_k attn[b,k] * h[b,k,:]
    c_t = jnp.sum(attn[:, :, None] * h, axis=1)                             # (b, n1)

    ct_ref[...]     = c_t
    attn_ref[...]   = attn
    covout_ref[...] = cov + attn            # coverage update (is_coverage=True)


def attention_decode_step(enc_feat, h, s_t_hat, enc_padding_mask, coverage, params):
    b, t_k, n1 = h.shape
    return pl.pallas_call(
        attention_decode_kernel,
        out_shape=(
            jax.ShapeDtypeStruct((b, n1), jnp.float32),    # c_t
            jax.ShapeDtypeStruct((b, t_k), jnp.float32),   # attn_dist (lane-dense)
            jax.ShapeDtypeStruct((b, t_k), jnp.float32),   # coverage (updated)
        ),
    )(enc_feat, h, s_t_hat, enc_padding_mask, coverage,
      params["Wd"], params["bd"], params["Wc"], params["v"])


def attention_forward(s_t_hat, h, enc_padding_mask, coverage, params):
    """Equivalent to Attention.forward (is_coverage=True, other flags off)."""
    # TODO(synk): in a real decoder loop, call precompute_encoder_features once
    # per sequence and pass enc_feat through the loop instead of recomputing.
    enc_feat = precompute_encoder_features(h, params["W_h"])
    return attention_decode_step(enc_feat, h, s_t_hat, enc_padding_mask,
                                 coverage, params)


# ---------------------------------------------------------------------------
# Pure-JAX reference mirroring the PyTorch forward.
# ---------------------------------------------------------------------------
def attention_reference(s_t_hat, h, enc_padding_mask, coverage, params):
    b, t_k, n1 = h.shape
    hf = h.reshape(-1, n1)
    enc_feat = hf @ params["W_h"]                                  # (b*t_k, 2H)
    dec_fea = s_t_hat @ params["Wd"] + params["bd"][0]             # (b, 2H)
    dec_exp = jnp.repeat(dec_fea[:, None, :], t_k, axis=1).reshape(-1, dec_fea.shape[-1])
    cov_feat = coverage.reshape(-1, 1) * params["Wc"]              # W_c(coverage)
    e = jnp.tanh(enc_feat + dec_exp + cov_feat)
    scores = (e * params["v"]).sum(-1).reshape(b, t_k)
    scores = jax.nn.softmax(scores, axis=1) * enc_padding_mask
    attn = scores / scores.sum(1, keepdims=True)
    c_t = jnp.einsum("bk,bkn->bn", attn, h)
    return c_t, attn, coverage + attn


if __name__ == "__main__":
    # config: sem_dim_size=8, hidden_dim=16
    sem_dim, hidden = 8, 16
    H2 = 2 * hidden                           # 32
    n1 = 2 * sem_dim + 2 * hidden             # encoder_op_size = 48
    b, t_k = 2, 8

    key = jax.random.PRNGKey(0)
    ks = jax.random.split(key, 10)
    h        = jax.random.normal(ks[0], (b, t_k, n1), jnp.float32)
    s_t_hat  = jax.random.normal(ks[1], (b, H2), jnp.float32)
    coverage = jax.random.uniform(ks[2], (b, t_k), jnp.float32)
    mask     = jnp.concatenate(
        [jnp.ones((b, t_k - 2), jnp.float32), jnp.zeros((b, 2), jnp.float32)], axis=1)

    scale = 0.1
    params = {
        "W_h": scale * jax.random.normal(ks[3], (n1, H2), jnp.float32),
        "Wd":  scale * jax.random.normal(ks[4], (H2, H2), jnp.float32),
        "bd":  scale * jax.random.normal(ks[5], (1, H2), jnp.float32),
        "Wc":  scale * jax.random.normal(ks[6], (1, H2), jnp.float32),
        "v":   scale * jax.random.normal(ks[7], (1, H2), jnp.float32),
    }

    c_t, attn_dist, cov_out = jax.block_until_ready(
        attention_forward(s_t_hat, h, mask, coverage, params))

    c_ref, a_ref, cov_ref = attention_reference(s_t_hat, h, mask, coverage, params)
    # Tolerance loosened slightly vs exact math because the kernel uses the
    # hardware-approximate EUP reciprocal for the softmax normalization.
    np.testing.assert_allclose(np.asarray(c_t), np.asarray(c_ref), rtol=5e-3, atol=5e-3)
    np.testing.assert_allclose(np.asarray(attn_dist), np.asarray(a_ref), rtol=5e-3, atol=5e-3)
    np.testing.assert_allclose(np.asarray(cov_out), np.asarray(cov_ref), rtol=5e-3, atol=5e-3)

    print("KERNEL_OK")
</pallas_src>

<mosaic_0001>
module attributes {stable_mosaic.version = 11 : i64} {
  func.func @encoder_features_kernel(%arg0: memref<16x48xf32, #tpu.memory_space<vmem>>, %arg1: memref<48x32xf32, #tpu.memory_space<vmem>>, %arg2: memref<16x32xf32, #tpu.memory_space<vmem>>) attributes {dimension_semantics = [], scalar_prefetch = 0 : i64, scratch_operands = 0 : i64, tpu.core_type = #tpu.core_type<tc>} {
    %c0 = arith.constant 0 : index
    %c0_0 = arith.constant 0 : index
    %0 = vector.load %arg0[%c0, %c0_0] : memref<16x48xf32, #tpu.memory_space<vmem>>, vector<16x48xf32>
    %c0_1 = arith.constant 0 : index
    %c0_2 = arith.constant 0 : index
    %1 = vector.load %arg1[%c0_1, %c0_2] : memref<48x32xf32, #tpu.memory_space<vmem>>, vector<48x32xf32>
    %cst = arith.constant dense<0.000000e+00> : vector<16x32xf32>
    %2 = tpu.matmul %0, %1, %cst {dimension_numbers = #tpu.dot_dimension_numbers<[1], [0], [0], [1], [0, 0, 1, 1], [], []>} : vector<16x48xf32>, vector<48x32xf32>, vector<16x32xf32> -> vector<16x32xf32>
    %c0_3 = arith.constant 0 : index
    %c0_4 = arith.constant 0 : index
    %3 = vector.load %arg2[%c0_3, %c0_4] : memref<16x32xf32, #tpu.memory_space<vmem>>, vector<16x32xf32>
    tpu.vector_store %arg2[%c0_3, %c0_4], %2 {strides = array<i32>} : memref<16x32xf32, #tpu.memory_space<vmem>>, vector<16x32xf32>,
    return
  }
}

</mosaic_0001>

<bundles_post_ra>
// kernel: tpu_custom_call.1
= control target key start
LH: loop header
LB: loop body
LE: loop exit
PB: predicated region body
PF: predicated region fallthrough
CT: control target
= control target key end

     0   :  { %vm20_vm0 = vcmask 392192   ;;  %s241_s0 = inlined_call_operand.vmem [shape: f32[16,48], index: 0, kind: input, shape index: {}]   ;;  %s242_s1 = inlined_call_operand.vmem [shape: f32[48,32], index: 1, kind: input, shape index: {}]   ;;  %s243_s2 = inlined_call_operand.hbm [shape: f32[16,32], index: 2, kind: output, shape index: {}]  }
   0x1   :  { %v14_v0 = vld [vmem:[%s242_s1] sm:$0xff]  ;;  %v15_v1 = vld [vmem:[%s242_s1 + $0x8] sm:$0xff]  ;;  %v16_v2 = vld [vmem:[%s242_s1 + $0x10] sm:$0xff] }
   0x2   :  { %v146_v3 = vpack.c.bf16 %v15_v1, %v14_v0  ;;  %v17_v4 = vld [vmem:[%s242_s1 + $0x18] sm:$0xff]  ;;  %v18_v5 = vld [vmem:[%s242_s1 + $0x20] sm:$0xff]  ;;  %v19_v7 = vld [vmem:[%s242_s1 + $0x28] sm:$0xff] }
   0x3   :  { %v150_v6 = vpack.c.bf16 %v17_v4, %v16_v2  ;;  %v12_v8 = vld [vmem:[%s241_s0] sm:$0xff] }
   0x4   :  { %7 = vsyncpa [#allocation3], 0  ;;  %147 = vmatprep.subr.bf16.mxu0 %v146_v3  ;;  %143 = vmatprep.mubr.msk.f32.mxu0 %vm20_vm0, %v12_v8  ;;  %v154_v9 = vpack.c.bf16 %v19_v7, %v18_v5  ;;  %v13_v10 = vld [vmem:[%s241_s0 + $0x8] sm:$0xff]  ;;  %s185_s1 = smov [#allocation2]   ;;  %vm102_vm1 = vcmask 261120  }
   0x5   :  { %149 = vmatpush3.bf16.msra.mxu0 %v146_v3  ;;  %s110_s25 = sshll.u32 %s185_s1, 4  ;;  %s111_s25 = int_to_ptr.vmem [resolvable:$true] %s110_s25 }
   0x6   :  { %151 = vmatprep.subr.bf16.mxu0 %v150_v6  ;;  %s161_s26 = scalar_lea.vmem %s111_s25, 256  ;;  %p166_p1 = scmp.lt.s32.totalorder %s111_s25, %s111_s25 }
   0x7   :  { %p162_p0 = scmp.ne.s32.totalorder %s111_s25, %s161_s26  ;;  %p167_p2 = scmp.lt.s32.totalorder %s161_s26, %s161_s26 }
   0x9   :  { %153 = vmatpush3.bf16.msra.mxu0 %v150_v6  ;;  %p168_p3 = por %p167_p2, %p166_p1 }
   0xa   :  { %155 = vmatprep.subr.bf16.mxu0 %v154_v9 }
   0xb   :  { %p169_p4 = pnand %p168_p3, %p162_p0 }
   0xd   :  { %157 = vmatpush3.bf16.msra.mxu0 %v154_v9 }
  0x10   :  { %144 = vmatmul.mubr.msk.f32.vlgmr.msra.gmra.mrb[0].mxu0 %vm20_vm0, %v13_v10 }
  0xe3   :  { %v145_v11 = vpop.f32.mrb[0].mxu0 }
  0xe4   :  { %104 = vst.msk [vmem:[#allocation2 + $0x8] sm:$0xff] %vm102_vm1, %v145_v11  ;;  %v93_v12 = vpop.f32.mrb[1].mxu0 }
  0xe5   :  { %103 = vst.msk [vmem:[#allocation2] sm:$0xff] %vm102_vm1, %v93_v12 }
  0xe6   :  { %172 = shalt.err (!%p169_p4)
}
  0xe7   :  { %s173_s0 = scalar_lea.hbm %s243_s2, 256 }
  0xe8   :  { %p174_p5 = scmp.ne.s32.totalorder %s243_s2, %s173_s0  ;;  %p177_p6 = scmp.lt.u32.totalorder %s173_s0, %s243_s2 }
  0xea   :  { %p179_p7 = pnand %p177_p6, %p174_p5 }
  0xec   :  { %182 = shalt.err (!%p179_p7)
}
  0xed   :  { %s186_s5 = smov 128   ;;  %s187_s6 = smov 8  }
  0xee   :  { %116 = dma.vmem_to_hbm [thread:$0]  %s111_s25, 256, %s243_s2, [#allocation3], %s186_s5, %s186_s5, %s187_s6  }
  0xef   :  { %183 = dma.done.wait [#allocation3], 256  }
  0xf0   :  { %184 = vsyncadd [#allocation3], 4294967040 }
  0xf1   :  { %120 = vsyncpa [#allocation3], 1 }

</bundles_post_ra>
